<compile_context>
chip_gen: v6e
topology: v6e:2x2x1
jax: 0.10.0
libtpu: 0.0.40
codegen_flags: <defaults>
</compile_context>

<pallas_src>
import jax
import jax.numpy as jnp
from jax.experimental import pallas as pl
from jax.experimental.pallas import tpu as pltpu


_LANE = 128
_MAX_ROWS = 1024             # HBM-roofline sweet spot (85-86% at 512-1024 rows)
_V7X_SAFE_BUDGET = 40 << 20  # keep the double-buffered footprint well under
                             # v7x's 64 MiB physical VMEM


def _sublane(dtype) -> int:
    # Native sublane packing: 4-byte -> 8 rows, 2-byte -> 16, 1-byte -> 32.
    return max(8, 32 // jnp.dtype(dtype).itemsize)


def _round_up(x: int, m: int) -> int:
    return ((x + m - 1) // m) * m


def _padded_tile_bytes(rows: int, cols: int, dtype) -> int:
    """VMEM bytes of one (rows, cols) tile after (sublane, lane) padding."""
    d = jnp.dtype(dtype)
    return (_round_up(max(rows, 1), _sublane(d))
            * _round_up(max(cols, 1), _LANE)
            * d.itemsize)


def _concat_vec_kernel(seq_ref, vec_ref, out_ref):
    # seq_ref: (TB, TS, D1)  vec_ref: (TB, 1, D2)  out_ref: (TB, TS, D1 + D2)
    d1 = seq_ref.shape[-1]
    d2 = vec_ref.shape[-1]
    tb, ts = out_ref.shape[0], out_ref.shape[1]

    # Seq half: straight slice store (cast on the fly if dtypes differ).
    out_ref[:, :, :d1] = seq_ref[...].astype(out_ref.dtype)

    # Vec half: one sublane-broadcast feeding a single slice store. Mosaic
    # keeps the (TB,1,D2)->(TB,TS,D2) broadcast sublane-replicated (no fill
    # loop); its padded footprint is still charged to the VMEM budget in the
    # wrapper so v5e/v7x scoped-VMEM limits are respected.
    out_ref[:, :, d1:] = jnp.broadcast_to(
        vec_ref[...].astype(out_ref.dtype), (tb, ts, d2))


def concat_vec(seq: jax.Array, vec: jax.Array,
               *, vmem_budget_bytes: int = 24 * 1024 * 1024,
               min_grid_steps: int = 2) -> jax.Array:
    """seq: (B, S, D1), vec: (B, D2) -> (B, S, D1 + D2)."""
    B, S, D1 = seq.shape
    Bv, D2 = vec.shape
    assert B == Bv, "batch dims must match"
    out_dtype = jnp.result_type(seq.dtype, vec.dtype)

    # ---- padding-aware VMEM footprint model --------------------------------
    budget = min(int(vmem_budget_bytes), _V7X_SAFE_BUDGET)

    def footprint(tb: int, ts: int) -> int:
        seq_t = tb * _padded_tile_bytes(ts, D1, seq.dtype)
        out_t = tb * _padded_tile_bytes(ts, D1 + D2, out_dtype)
        vec_t = tb * _padded_tile_bytes(1, D2, vec.dtype)
        bcast = tb * _padded_tile_bytes(ts, D2, out_dtype)  # in-kernel broadcast
        return 2 * (seq_t + out_t + vec_t) + bcast          # 2x = double buffer

    # ---- tile selection ------------------------------------------------------
    sub = max(_sublane(seq.dtype), _sublane(out_dtype))
    rows = sub
    for cand in range(sub, _MAX_ROWS + 1, sub):
        if footprint(1, cand) <= budget:
            rows = cand
        else:
            break

    if S <= rows:
        # Whole sequence per step; fuse as many batches as really fit.
        TS = S
        tb_cap = max(1, budget // max(1, footprint(1, S)))
        TB = max(1, min(B, tb_cap))          # ragged last batch tile is fine
    else:
        # Stream the sequence in 512-1024 row tiles when the budget allows.
        TS = rows
        TB = 1

    # v7x has 2 TensorCores: keep >= min_grid_steps steps along a "parallel"
    # axis so both cores get work (harmless on single-TC v5e/v6e).
    if pl.cdiv(B, TB) * pl.cdiv(S, TS) < min_grid_steps:
        if B >= 2:
            TB = -(-B // 2)                   # ceil(B/2) -> exactly 2 batch steps
        elif S >= 2 * sub:
            TS = _round_up(-(-S // 2), sub)   # ~half the rows, sublane-aligned

    grid = (pl.cdiv(B, TB), pl.cdiv(S, TS))

    # Raise the scoped-VMEM limit so v5e's 16 MiB default never shrinks the
    # tile; clamp to 48 MiB, which stays inside every generation's physical
    # VMEM (v7x: 64 MiB per TensorCore).
    vmem_limit = int(min(max(32 << 20, footprint(TB, TS) * 5 // 4), 48 << 20))

    # Explicit singleton seq axis so block shapes line up cleanly.
    vec3 = vec.reshape(B, 1, D2)

    return pl.pallas_call(
        _concat_vec_kernel,
        out_shape=jax.ShapeDtypeStruct((B, S, D1 + D2), out_dtype),
        grid_spec=pltpu.PrefetchScalarGridSpec(
            num_scalar_prefetch=0,
            grid=grid,
            in_specs=[
                pl.BlockSpec((TB, TS, D1), lambda bi, si: (bi, si, 0)),
                # index_map independent of si -> the tiny vec block is not
                # re-DMA'd across sequence steps for a fixed batch tile.
                pl.BlockSpec((TB, 1, D2), lambda bi, si: (bi, 0, 0)),
            ],
            out_specs=pl.BlockSpec((TB, TS, D1 + D2), lambda bi, si: (bi, si, 0)),
        ),
        compiler_params=pltpu.CompilerParams(
            dimension_semantics=("parallel", "parallel"),
            vmem_limit_bytes=vmem_limit,
        ),
    )(seq, vec3)


def _ref_concat(seq, vec):
    B, S, _ = seq.shape
    D2 = vec.shape[-1]
    out_dtype = jnp.result_type(seq.dtype, vec.dtype)
    return jnp.concatenate(
        [seq.astype(out_dtype),
         jnp.broadcast_to(vec[:, None, :].astype(out_dtype), (B, S, D2))],
        axis=-1,
    )


if __name__ == "__main__":
    key = jax.random.PRNGKey(0)
    k1, k2, k3, k4, k5 = jax.random.split(key, 5)

    # Case 1: basic shapes consistent with the forward:
    # batch=2, seq_len=8, seq feature dim=32, vec feature dim=16.
    B, S, D1, D2 = 2, 8, 32, 16
    seq = jax.random.normal(k1, (B, S, D1), dtype=jnp.float32)
    vec = jax.random.normal(k2, (B, D2), dtype=jnp.float32)
    out = concat_vec(seq, vec)
    jax.block_until_ready(out)
    assert out.shape == (B, S, D1 + D2)
    assert jnp.array_equal(out, _ref_concat(seq, vec)), "case 1 mismatch"

    # Case 2: force the S-tiling path (tiny VMEM budget -> small TS, partial
    # last S tile) to exercise grid masking along the sequence axis.
    S2 = 40
    seq2 = jax.random.normal(k3, (B, S2, D1), dtype=jnp.float32)
    out2 = concat_vec(seq2, vec, vmem_budget_bytes=64 * 1024)
    jax.block_until_ready(out2)
    assert out2.shape == (B, S2, D1 + D2)
    assert jnp.array_equal(out2, _ref_concat(seq2, vec)), "case 2 mismatch"

    # Case 3: mixed dtypes (bf16 seq, f32 vec) -> cast happens inside kernel.
    seq3 = jax.random.normal(k4, (B, S, D1), dtype=jnp.bfloat16)
    out3 = concat_vec(seq3, vec)
    jax.block_until_ready(out3)
    assert out3.dtype == jnp.float32
    assert jnp.array_equal(out3, _ref_concat(seq3, vec)), "case 3 mismatch"

    # Case 4: odd batch (B=3) -> ragged last batch tile + >=2 grid steps.
    B3 = 3
    seq4 = jax.random.normal(k5, (B3, S, D1), dtype=jnp.float32)
    vec4 = jax.random.normal(k2, (B3, D2), dtype=jnp.float32)
    out4 = concat_vec(seq4, vec4)
    jax.block_until_ready(out4)
    assert out4.shape == (B3, S, D1 + D2)
    assert jnp.array_equal(out4, _ref_concat(seq4, vec4)), "case 4 mismatch"

    print("KERNEL_OK")
</pallas_src>

<mosaic_0001>
module attributes {stable_mosaic.version = 11 : i64} {
  func.func @_concat_vec_kernel(%arg0: i32, %arg1: i32, %arg2: memref<1x8x32xf32, #tpu.memory_space<vmem>>, %arg3: memref<1x1x16xf32, #tpu.memory_space<vmem>>, %arg4: memref<1x8x48xf32, #tpu.memory_space<vmem>>) attributes {dimension_semantics = [#tpu.dimension_semantics<parallel>, #tpu.dimension_semantics<parallel>], iteration_bounds = array<i64: 2, 1>, scalar_prefetch = 0 : i64, scratch_operands = 0 : i64, tpu.core_type = #tpu.core_type<tc>, window_params = [{transform_indices = @transform_0, window_bounds = array<i64: 1, 8, 32>}, {transform_indices = @transform_1, window_bounds = array<i64: 1, 1, 16>}, {transform_indices = @transform_2, window_bounds = array<i64: 1, 8, 48>}]} {
    %c0 = arith.constant 0 : index
    %c0_0 = arith.constant 0 : index
    %c0_1 = arith.constant 0 : index
    %0 = vector.load %arg2[%c0, %c0_0, %c0_1] : memref<1x8x32xf32, #tpu.memory_space<vmem>>, vector<1x8x32xf32>
    %c0_2 = arith.constant 0 : index
    %c0_3 = arith.constant 0 : index
    %c0_4 = arith.constant 0 : index
    %1 = vector.load %arg4[%c0_2, %c0_3, %c0_4] : memref<1x8x48xf32, #tpu.memory_space<vmem>>, vector<1x8x32xf32>
    tpu.vector_store %arg4[%c0_2, %c0_3, %c0_4], %0 {strides = array<i32>} : memref<1x8x48xf32, #tpu.memory_space<vmem>>, vector<1x8x32xf32>,
    %c0_5 = arith.constant 0 : index
    %c0_6 = arith.constant 0 : index
    %c0_7 = arith.constant 0 : index
    %2 = vector.load %arg3[%c0_5, %c0_6, %c0_7] : memref<1x1x16xf32, #tpu.memory_space<vmem>>, vector<1x1x16xf32>
    %3 = vector.shape_cast %2 : vector<1x1x16xf32> to vector<1x1x16xf32>
    %4 = vector.broadcast %3 : vector<1x1x16xf32> to vector<1x8x16xf32>
    %c0_8 = arith.constant 0 : index
    %c0_9 = arith.constant 0 : index
    %c32 = arith.constant 32 : index
    %5 = vector.load %arg4[%c0_8, %c0_9, %c32] : memref<1x8x48xf32, #tpu.memory_space<vmem>>, vector<1x8x16xf32>
    tpu.vector_store %arg4[%c0_8, %c0_9, %c32], %4 {strides = array<i32>} : memref<1x8x48xf32, #tpu.memory_space<vmem>>, vector<1x8x16xf32>,
    return
  }
  func.func @transform_0(%arg0: i32, %arg1: i32) -> (i32, i32, i32) {
    %c0_i32 = arith.constant 0 : i32
    %c0_i32_0 = arith.constant 0 : i32
    return %arg0, %arg1, %c0_i32 : i32, i32, i32
  }
  func.func @transform_1(%arg0: i32, %arg1: i32) -> (i32, i32, i32) {
    %c0_i32 = arith.constant 0 : i32
    %c0_i32_0 = arith.constant 0 : i32
    %c0_i32_1 = arith.constant 0 : i32
    return %arg0, %c0_i32, %c0_i32_0 : i32, i32, i32
  }
  func.func @transform_2(%arg0: i32, %arg1: i32) -> (i32, i32, i32) {
    %c0_i32 = arith.constant 0 : i32
    %c0_i32_0 = arith.constant 0 : i32
    return %arg0, %arg1, %c0_i32 : i32, i32, i32
  }
}

</mosaic_0001>

<bundles_post_ra>
// kernel: tpu_custom_call.1
= control target key start
LH: loop header
LB: loop body
LE: loop exit
PB: predicated region body
PF: predicated region fallthrough
CT: control target
= control target key end

     0   :  { %7 = vsyncpa [#allocation3], 0  ;;  %s753_s0 = inlined_call_operand.hbm [shape: f32[2,8,32], index: 0, kind: input, shape index: {}]   ;;  %s754_s1 = inlined_call_operand.hbm [shape: f32[2,1,16], index: 1, kind: input, shape index: {}]   ;;  %s755_s2 = inlined_call_operand.hbm [shape: f32[2,8,48], index: 2, kind: output, shape index: {}]  }
   0x1   :  { %9 = vsyncpa [#allocation3 + $0x1], 0 }
   0x2   :  { %10 = vsyncpa [#allocation6], 0 }
   0x3   :  { %12 = vsyncpa [#allocation6 + $0x1], 0 }
   0x4   :  { %13 = vsyncpa [#allocation4], 0 }
   0x5   :  { %15 = vsyncpa [#allocation4 + $0x1], 0  ;;  %s583_s9 = smov 0   ;;  %s585_s10 = smov 0  }
   0x6   :  { %s587_s11 = smov 0   ;;  %s589_s12 = smov 0  }
   0x7   :  { %s591_s13 = smov 0   ;;  %s593_s14 = smov 0  }
   0x8 LB: > { %s339_s15 = sadd.s32 4294967295, %s562_s14   ;;  %s340_s16 = sadd.s32 4294967294, %s562_s14   ;;  %s562_s14 = sphi %s593_s14, %s21_s14   ;;  %s558_s13 = sphi %s591_s13, %s767_s13   ;;  %s554_s12 = sphi %s589_s12, %s766_s12   ;;  %s550_s11 = sphi %s587_s11, %s765_s11   ;;  %s546_s10 = sphi %s585_s10, %s764_s10   ;;  %s542_s9 = sphi %s583_s9, %s763_s9  }
   0x9   : > { %s33_s17 = sadd.s32 1, %s558_s13  ;;  %s42_s18 = sadd.s32 1, %s550_s11 }
   0xa   : > { %p35_p0 = scmp.ge.s32.totalorder %s33_s17, 2  ;;  %p49_p1 = scmp.ne.s32.totalorder %s550_s11, %s546_s10 }
   0xb   : > { %p50_p2 = scmp.eq.s32.totalorder %s562_s14, 0  ;;  %p55_p3 = scmp.ne.s32.totalorder %s546_s10, %s542_s9 }
   0xc   : > { %s769_s17 = smov (%p35_p0, %s33_s17), 0  ;;  %p56_p5 = scmp.eq.s32.totalorder %s339_s15, 0 }
   0xd   : > { %p624_p4 = por %p50_p2, %p49_p1  ;;  %s37_s20 = ssub.s32 %s558_s13, %s769_s17 }
   0xe   : > { %p107_p6 = scmp.eq.s32.totalorder %s339_s15, 1  ;;  %p40_p7 = scmp.eq.s32.totalorder %s37_s20, 0 }
   0xf   : > { %p630_p8 = por %p56_p5, %p55_p3  ;;  %p113_p10 = scmp.eq.s32.totalorder %s340_s16, 1 }
  0x10   : > { %p634_p9 = por %p107_p6, %p49_p1  ;;  %p371_p13 = scmp.lt.s32.totalorder %s562_s14, 2 }
  0x11   : > { %s639_s23 = scalar_select %p40_p7, %s550_s11, %s42_s18  }
  0x12   : > { %p641_p11 = por %p113_p10, %p55_p3  ;;  %s648_s25 = sand.u32 1, %s550_s11  }
  0x13   : > { %s343_s26 = sshll.u32 %s648_s25, 3  ;;  %s344_s27 = sshll.u32 %s558_s13, 7 }
  0x14   : > { %s143_s30 = scalar_lea.hbm %s753_s0, %s344_s27  ;;  %s137_s3 = scalar_lea.vmem [#allocation2], %s343_s26 }
  0x15   : > { %s145_s4 = sshll.u32 %s137_s3, 4  ;;  %p657_p0 = pnand %p371_p13, %p624_p4  ;;  %s146_s4 = int_to_ptr.vmem [resolvable:$true] %s145_s4 }
  0x16   : > { %p346_p1 = scmp.ge.s32.totalorder %s562_s14, 1  ;;  %p167_p2 = scmp.lt.s32.totalorder %s562_s14, 3 }
  0x17   : > { %s134_s6 = scalar_lea.sflag [#allocation3], %s648_s25  ;;  %p424_p3 = pneg %p657_p0 }
  0x18   : > { %s435_s7 = scalar_lea.vmem %s146_s4, 128  ;;  %s564_s8 = smov [#allocation2]  }
  0x19   : > { %p436_p5 = scmp.ne.s32.totalorder %s146_s4, %s435_s7  ;;  %s440_s15 = sshll.u32 %s564_s8, 4  ;;  %s441_s15 = int_to_ptr.vmem [resolvable:$false] %s440_s15 }
  0x1a   : > { %s442_s16 = scalar_lea.vmem %s441_s15, 256  ;;  %p443_p4 = scmp.lt.s32.totalorder %s146_s4, %s441_s15 }
  0x1b   : > { %p438_p6 = pnand %p436_p5, %p424_p3  ;;  %p444_p10 = scmp.lt.s32.totalorder %s442_s16, %s435_s7 }
  0x1d   : > { %p439_p7 = pneg %p438_p6  ;;  %p445_p13 = por %p444_p10, %p443_p4 }
  0x1f   : > { %p446_p12 = pnand %p445_p13, %p439_p7 }
  0x21   : > { %449 = shalt.err (!%p446_p12)
}
  0x22   : > { %363 = dma.hbm_to_vmem [thread:$0]  (!%p657_p0), %s143_s30, 128, %s146_s4, %s134_s6  }
  0x23   : > { %p675_p5 = pnand %p346_p1, %p167_p2  ;;  %s345_s19 = sshll.u32 %s558_s13, 4 }
  0x24   : > { %s155_s20 = scalar_lea.vmem [#allocation5], %s648_s25  ;;  %s160_s29 = scalar_lea.hbm %s754_s1, %s345_s19 }
  0x25   : > { %s162_s26 = sshll.u32 %s155_s20, 4  ;;  %s153_s3 = scalar_lea.sflag [#allocation6], %s648_s25  ;;  %s163_s26 = int_to_ptr.vmem [resolvable:$true] %s162_s26 }
  0x26   : > { %s463_s7 = scalar_lea.vmem %s163_s26, 16  ;;  %s565_s30 = smov [#allocation5]  }
  0x27   : > { %p464_p12 = scmp.ne.s32.totalorder %s163_s26, %s463_s7  ;;  %s468_s4 = sshll.u32 %s565_s30, 4  ;;  %s469_s4 = int_to_ptr.vmem [resolvable:$false] %s468_s4 }
  0x28   : > { %s470_s6 = scalar_lea.vmem %s469_s4, 32  ;;  %p471_p1 = scmp.lt.s32.totalorder %s163_s26, %s469_s4 }
  0x29   : > { %p466_p6 = pnand %p464_p12, %p424_p3  ;;  %p472_p2 = scmp.lt.s32.totalorder %s470_s6, %s463_s7 }
  0x2b   : > { %p467_p7 = pneg %p466_p6  ;;  %p473_p4 = por %p472_p2, %p471_p1 }
  0x2d   : > { %p474_p10 = pnand %p473_p4, %p467_p7 }
  0x2f   : > { %477 = shalt.err (!%p474_p10)
}
  0x30   : > { %366 = dma.hbm_to_vmem [thread:$0]  (!%p657_p0), %s160_s29, 16, %s163_s26, %s153_s3  }
  0x31   : > { %171 = sbr.rel (%p675_p5) target bundleno = 187 (0xbb), region = 28  ;;  %s693_s25 = sand.u32 (!%p675_p5), 1, %s546_s10  }
  0x32   : > { %s347_s8 = sshll.u32 (!%p675_p5), %s693_s25, 3  ;;  %s174_s15 = scalar_lea.sflag (!%p675_p5), [#allocation3], %s693_s25 }
  0x33   : > { %s177_s16 = scalar_lea.vmem (!%p675_p5), [#allocation2], %s347_s8 }
  0x36   : > { %529 = dma.done.wait (%p630_p8), %s174_s15, 128  }
  0x37   : > { %531 = vsyncadd (%p630_p8), %s174_s15, 4294967168  ;;  %s183_s5 = scalar_lea.sflag [#allocation6], %s693_s25  ;;  %s185_s18 = scalar_lea.vmem [#allocation5], %s693_s25 }
  0x38   : > { %533 = dma.done.wait (%p630_p8), %s183_s5, 16  }
  0x39   : > { %535 = vsyncadd (%p630_p8), %s183_s5, 4294967280  ;;  %vm211_vm0 = vcmask 261120   ;;  %v210_v0 = vld [vmem:[%s177_s16] sm:$0xff]  ;;  %s209_s19 = scalar_lea.vmem [#allocation7], %s347_s8  ;;  %s566_s20 = smov 32   ;;  %vm222_vm1 = vcmask 392448  }
  0x3a   : > { %v349_v1 = vld [vmem:[%s185_s18] ss:$0 sm:$0xff]  ;;  %212 = vst.msk [vmem:[%s209_s19] sm:$0xff] %vm211_vm0, %v210_v0  ;;  %s351_s26 = sshll.u32 %s554_s12, 7  ;;  %s239_s27 = sshll.u32 %s209_s19, 4  ;;  %s240_s27 = int_to_ptr.vmem [resolvable:$true] %s239_s27 }
  0x3b   : > { %219 = vrot.lane.b32.xlu0 %v349_v1, %s566_s20  ;;  %s711_s3 = scalar_lea.hbm %s755_s2, %s351_s26  ;;  %s225_s21 = scalar_lea.sflag [#allocation4], %s693_s25 }
  0x3c   : > { %s478_s7 = scalar_lea.vmem %s240_s27, 128  ;;  %s567_s30 = smov [#allocation7]  }
  0x3d   : > { %p479_p8 = scmp.ne.s32.totalorder %s240_s27, %s478_s7  ;;  %s482_s4 = sshll.u32 %s567_s30, 4  ;;  %s483_s4 = int_to_ptr.vmem [resolvable:$false] %s482_s4 }
  0x3e   : > { %s484_s12 = scalar_lea.vmem %s483_s4, 256  ;;  %p485_p13 = scmp.lt.s32.totalorder %s240_s27, %s483_s4 }
  0x3f   : > { %p480_p0 = pnand %p479_p8, %p634_p9  ;;  %p486_p5 = scmp.lt.s32.totalorder %s484_s12, %s478_s7 }
  0x41   : > { %p481_p3 = pneg %p480_p0  ;;  %p487_p12 = por %p486_p5, %p485_p13 }
  0x43   : > { %p488_p6 = pnand %p487_p12, %p481_p3 }
  0xad   : > { %v220_v2 = vpop.permute.xlu0 %219 }
  0xae   : > { %223 = vst.msk [vmem:[%s209_s19] sm:$0xff] %vm222_vm1, %v220_v2 }
  0xaf   : > { %491 = shalt.err (!%p488_p6)
}
  0xb0   : > { %s492_s6 = scalar_lea.hbm %s711_s3, 128  ;;  %s496_s15 = scalar_lea.hbm %s755_s2, 256 }
  0xb1   : > { %p493_p7 = scmp.ne.s32.totalorder %s711_s3, %s492_s6  ;;  %p497_p4 = scmp.lt.s32.totalorder %s711_s3, %s755_s2 }
  0xb2   : > { %p498_p10 = scmp.lt.s32.totalorder %s496_s15, %s492_s6 }
  0xb3   : > { %p494_p1 = pnand %p493_p7, %p634_p9 }
  0xb4   : > { %p499_p8 = por %p498_p10, %p497_p4 }
  0xb5   : > { %p495_p2 = pneg %p494_p1 }
  0xb7   : > { %p500_p0 = pnand %p499_p8, %p495_p2 }
  0xb9   : > { %503 = shalt.err (!%p500_p0)
}
  0xba   : > { %358 = dma.vmem_to_hbm [thread:$0]  (%p634_p9), %s240_s27, 128, %s711_s3, %s225_s21  }
  0xbb PF: > { %s251_s18 = sand.u32 1, %s542_s9   ;;  %p762_p3 = scmp.ge.s32.totalorder %s562_s14, 2 }
  0xbc   : > { %s252_s19 = scalar_lea.sflag [#allocation4], %s251_s18 }
  0xbd   : > { %p368_p13 = pnand %p762_p3, %p641_p11 }
  0xbf   : > { %p369_p5 = pneg %p368_p13 }
  0xc1   : > { %537 = dma.done.wait (%p369_p5), %s252_s19, 128  }
  0xc2   : > { %539 = vsyncadd (%p369_p5), %s252_s19, 4294967168  ;;  %s21_s14 = sadd.s32 1, %s562_s14   ;;  %s763_s9 = smov %s546_s10 }
  0xc3   : > { %p18_p12 = scmp.ge.s32.totalorder %s21_s14, 4   ;;  %s764_s10 = smov %s550_s11 }
  0xc4   : > { %s765_s11 = smov %s639_s23  ;;  %s766_s12 = smov %s558_s13 }
  0xc5   : > { %s767_s13 = smov %s769_s17  ;;  %20 = sbr.rel (!%p18_p12) target bundleno = 8 (0x8), region = 86 }
  0xca   :  { %257 = vsyncpa [#allocation3], 1 }
  0xcb   :  { %259 = vsyncpa [#allocation3 + $0x1], 1 }
  0xcc   :  { %260 = vsyncpa [#allocation6], 1 }
  0xcd   :  { %262 = vsyncpa [#allocation6 + $0x1], 1 }
  0xce   :  { %263 = vsyncpa [#allocation4], 1 }
  0xcf   :  { %265 = vsyncpa [#allocation4 + $0x1], 1 }

</bundles_post_ra>
